<compile_context>
chip_gen: v7x
topology: tpu7x:2x2x1
jax: 0.10.0
libtpu: 0.0.40
codegen_flags: <defaults>
</compile_context>

<pallas_src>
import functools

import jax
import jax.numpy as jnp
from jax.experimental import pallas as pl
from jax.experimental.pallas import tpu as pltpu

QK_NORM_SCALE = 10.0        # x-transformers qk_norm attention scale
_NEG_INF = -1e30
_VMEM_LIMIT = 64 * 1024 * 1024


# ----------------------------------------------------------------------------
# tiling helper
# ----------------------------------------------------------------------------
def _pick_tile(n, target, quantum):
    """Largest multiple of `quantum` dividing n that is <= target; else n (full)."""
    if n <= target:
        return n
    t = (target // quantum) * quantum
    while t >= quantum:
        if n % t == 0:
            return t
        t -= quantum
    return n


# ----------------------------------------------------------------------------
# fused (LayerNorm?) -> matmul -> bias -> (GELU?) -> (residual?) kernel
# ----------------------------------------------------------------------------
def _fused_matmul_kernel(x_ref, *rest, ln, act, residual):
    idx = 0
    if ln:
        g_ref = rest[idx]; idx += 1
    w_ref = rest[idx]; idx += 1
    b_ref = rest[idx]; idx += 1
    if residual:
        r_ref = rest[idx]; idx += 1
    o_ref = rest[idx]
    acc_ref = rest[idx + 1]

    k = pl.program_id(2)

    @pl.when(k == 0)
    def _init():
        acc_ref[...] = jnp.zeros(acc_ref.shape, acc_ref.dtype)

    x = x_ref[...]
    if ln:
        xf = x.astype(jnp.float32)
        mu = jnp.mean(xf, axis=-1, keepdims=True)
        xc = xf - mu
        var = jnp.mean(xc * xc, axis=-1, keepdims=True)
        x = xc * jax.lax.rsqrt(var + 1e-5) * g_ref[...].astype(jnp.float32)
    acc_ref[...] += jnp.dot(x.astype(jnp.bfloat16), w_ref[...],
                            preferred_element_type=jnp.float32)

    @pl.when(k == pl.num_programs(2) - 1)
    def _finalize():
        y = acc_ref[...] + b_ref[...].astype(jnp.float32)
        if act == "gelu":
            y = jax.nn.gelu(y)
        if residual:
            y = y + r_ref[...].astype(jnp.float32)
        o_ref[...] = y.astype(o_ref.dtype)


def fused_matmul(x, w, b, *, gamma=None, residual=None, act=None,
                 out_dtype=jnp.float32, tm_target=256, tn_target=256,
                 tk_target=512):
    """out = act(LN?(x) @ w + b) (+ residual?); w is bf16, accumulation f32."""
    M, K = x.shape
    Kw, N = w.shape
    assert K == Kw
    tm = _pick_tile(M, tm_target, 8)
    tn = _pick_tile(N, tn_target, 128)
    # LN reduction needs the full K row in one tile.
    tk = K if gamma is not None else _pick_tile(K, tk_target, 128)
    grid = (M // tm, N // tn, K // tk)

    in_specs = [pl.BlockSpec((tm, tk), lambda i, j, k: (i, k))]
    args = [x]
    if gamma is not None:
        in_specs.append(pl.BlockSpec((1, K), lambda i, j, k: (0, 0)))
        args.append(gamma)
    in_specs.append(pl.BlockSpec((tk, tn), lambda i, j, k: (k, j)))
    args.append(w)
    in_specs.append(pl.BlockSpec((1, tn), lambda i, j, k: (0, j)))
    args.append(b)
    if residual is not None:
        in_specs.append(pl.BlockSpec((tm, tn), lambda i, j, k: (i, j)))
        args.append(residual)

    kernel = functools.partial(_fused_matmul_kernel, ln=gamma is not None,
                               act=act, residual=residual is not None)
    return pl.pallas_call(
        kernel,
        out_shape=jax.ShapeDtypeStruct((M, N), out_dtype),
        grid=grid,
        in_specs=in_specs,
        out_specs=pl.BlockSpec((tm, tn), lambda i, j, k: (i, j)),
        scratch_shapes=[pltpu.VMEM((tm, tn), jnp.float32)],
        compiler_params=pltpu.CompilerParams(
            dimension_semantics=("parallel", "parallel", "arbitrary"),
            vmem_limit_bytes=_VMEM_LIMIT),
    )(*args)


# ----------------------------------------------------------------------------
# RoPE + qk-l2-norm pre-pass (hoisted out of the attention inner loop)
# operates on head-major (B, H, S, Dh) layout so attention gets cheap slicing.
# ----------------------------------------------------------------------------
def _rope_norm_kernel(q_ref, k_ref, cos_ref, sin_ref, qs_ref, ks_ref,
                      qo_ref, ko_ref):
    cos = cos_ref[...].astype(jnp.float32)[None, :, :]   # (1, tq, Dh)
    sin = sin_ref[...].astype(jnp.float32)[None, :, :]

    def transform(x_ref, s_ref, out_ref, extra_scale):
        x = x_ref[...].astype(jnp.float32)                # (Hx, tq, Dh)
        half = x.shape[-1] // 2
        x1 = x[..., :half]
        x2 = x[..., half:]
        xr = x * cos + jnp.concatenate([-x2, x1], axis=-1) * sin
        inv = jax.lax.rsqrt(jnp.sum(xr * xr, axis=-1, keepdims=True) + 1e-8)
        scale = s_ref[...].astype(jnp.float32)[:, None, :] * extra_scale
        out_ref[...] = (xr * inv * scale).astype(out_ref.dtype)

    transform(q_ref, qs_ref, qo_ref, QK_NORM_SCALE)   # fold 10x attn scale into q
    transform(k_ref, ks_ref, ko_ref, 1.0)


def rope_qk_norm(q, k, cos, sin, q_scale, k_scale):
    B, H, S, Dh = q.shape
    Hkv = k.shape[1]
    tq = _pick_tile(S, 256, 8)
    return pl.pallas_call(
        _rope_norm_kernel,
        out_shape=(jax.ShapeDtypeStruct((B, H, S, Dh), jnp.bfloat16),
                   jax.ShapeDtypeStruct((B, Hkv, S, Dh), jnp.bfloat16)),
        grid=(B, S // tq),
        in_specs=[
            pl.BlockSpec((None, H, tq, Dh), lambda b, i: (b, 0, i, 0)),
            pl.BlockSpec((None, Hkv, tq, Dh), lambda b, i: (b, 0, i, 0)),
            pl.BlockSpec((tq, Dh), lambda b, i: (i, 0)),
            pl.BlockSpec((tq, Dh), lambda b, i: (i, 0)),
            pl.BlockSpec((H, Dh), lambda b, i: (0, 0)),
            pl.BlockSpec((Hkv, Dh), lambda b, i: (0, 0)),
        ],
        out_specs=(
            pl.BlockSpec((None, H, tq, Dh), lambda b, i: (b, 0, i, 0)),
            pl.BlockSpec((None, Hkv, tq, Dh), lambda b, i: (b, 0, i, 0)),
        ),
        compiler_params=pltpu.CompilerParams(
            dimension_semantics=("parallel", "parallel"),
            vmem_limit_bytes=_VMEM_LIMIT),
    )(q, k, cos, sin, q_scale, k_scale)


# ----------------------------------------------------------------------------
# flash-style causal GQA attention with in-kernel alibi
# inputs head-major (B, H, S, Dh); output token-major (B, S, H*Dh).
# ----------------------------------------------------------------------------
def _flash_attn_kernel(slopes_ref, q_ref, k_ref, v_ref, o_ref,
                       m_ref, l_ref, acc_ref, *, tq, tkv, heads, group,
                       dim_head):
    qi = pl.program_id(1)
    ki = pl.program_id(2)
    nkv = pl.num_programs(2)
    q_start = qi * tq
    k_start = ki * tkv

    @pl.when(ki == 0)
    def _init():
        m_ref[...] = jnp.full(m_ref.shape, _NEG_INF, m_ref.dtype)
        l_ref[...] = jnp.zeros(l_ref.shape, l_ref.dtype)
        acc_ref[...] = jnp.zeros(acc_ref.shape, acc_ref.dtype)

    # skip KV blocks that lie entirely above the causal diagonal
    @pl.when(k_start <= q_start + tq - 1)
    def _compute():
        slopes = slopes_ref[...]                       # (1, H) f32
        q_pos = q_start + jax.lax.broadcasted_iota(jnp.int32, (tq, tkv), 0)
        k_pos = k_start + jax.lax.broadcasted_iota(jnp.int32, (tq, tkv), 1)
        dist = (q_pos - k_pos).astype(jnp.float32)
        neg_mask = jnp.where(k_pos <= q_pos, 0.0, _NEG_INF)

        for h in range(heads):                         # static unroll, shared kv tiles
            kv = h // group
            q_h = q_ref[h]                             # (tq, Dh)   bf16, leading-dim slice
            k_h = k_ref[kv]                            # (tkv, Dh)  bf16
            v_h = v_ref[kv]                            # (tkv, Dh)  bf16
            s = jax.lax.dot_general(q_h, k_h, (((1,), (1,)), ((), ())),
                                    preferred_element_type=jnp.float32)
            s = s - slopes[0, h] * dist + neg_mask     # alibi + causal mask
            m_prev = m_ref[h]                          # (tq, 1)
            m_new = jnp.maximum(m_prev, jnp.max(s, axis=-1, keepdims=True))
            alpha = jnp.exp(m_prev - m_new)
            p = jnp.exp(s - m_new)
            l_ref[h] = alpha * l_ref[h] + jnp.sum(p, axis=-1, keepdims=True)
            acc_ref[h] = alpha * acc_ref[h] + jax.lax.dot_general(
                p.astype(v_h.dtype), v_h, (((1,), (0,)), ((), ())),
                preferred_element_type=jnp.float32)
            m_ref[h] = m_new

    @pl.when(ki == nkv - 1)
    def _finalize():
        for h in range(heads):
            inv_l = pl.reciprocal(l_ref[h], approx=True)
            o_ref[:, h * dim_head:(h + 1) * dim_head] = (
                acc_ref[h] * inv_l).astype(o_ref.dtype)


def flash_attention(slopes, q, k, v, *, tq_target=128, tkv_target=128):
    B, H, S, Dh = q.shape
    Hkv = k.shape[1]
    group = H // Hkv
    inner = H * Dh
    tq = _pick_tile(S, tq_target, 8)
    tkv = _pick_tile(S, tkv_target, 8)
    kernel = functools.partial(_flash_attn_kernel, tq=tq, tkv=tkv,
                               heads=H, group=group, dim_head=Dh)
    return pl.pallas_call(
        kernel,
        out_shape=jax.ShapeDtypeStruct((B, S, inner), q.dtype),
        grid=(B, S // tq, S // tkv),
        in_specs=[
            pl.BlockSpec((1, H), lambda b, qi, ki: (0, 0)),
            pl.BlockSpec((None, H, tq, Dh), lambda b, qi, ki: (b, 0, qi, 0)),
            pl.BlockSpec((None, Hkv, tkv, Dh), lambda b, qi, ki: (b, 0, ki, 0)),
            pl.BlockSpec((None, Hkv, tkv, Dh), lambda b, qi, ki: (b, 0, ki, 0)),
        ],
        out_specs=pl.BlockSpec((None, tq, inner), lambda b, qi, ki: (b, qi, 0)),
        scratch_shapes=[
            pltpu.VMEM((H, tq, 1), jnp.float32),    # running max
            pltpu.VMEM((H, tq, 1), jnp.float32),    # running sum
            pltpu.VMEM((H, tq, Dh), jnp.float32),   # output accumulator
        ],
        compiler_params=pltpu.CompilerParams(
            dimension_semantics=("parallel", "parallel", "arbitrary"),
            vmem_limit_bytes=_VMEM_LIMIT),
    )(slopes, q, k, v)


# ----------------------------------------------------------------------------
# Parameter construction & helpers
# ----------------------------------------------------------------------------
def make_params(key, *, dim, depth, heads, dim_head, kv_heads, vocab,
                img_channels, patch_size):
    patch_dim = img_channels * patch_size * patch_size
    inner = heads * dim_head
    kv_inner = kv_heads * dim_head
    ff_inner = dim * 4

    def normal(k, shape, scale=0.02):
        return (scale * jax.random.normal(k, shape)).astype(jnp.bfloat16)

    keys = iter(jax.random.split(key, 4 + depth * 4))
    params = {
        "patch_w": normal(next(keys), (patch_dim, dim)),
        "patch_b": jnp.zeros((1, dim), jnp.float32),
        "ln_f": jnp.ones((1, dim), jnp.float32),
        "logits_w": normal(next(keys), (dim, vocab)),
        "logits_b": jnp.zeros((1, vocab), jnp.float32),
        "layers": [],
    }
    for _ in range(depth):
        layer = {
            "ln1": jnp.ones((1, dim), jnp.float32),
            "wqkv": normal(next(keys), (dim, inner + 2 * kv_inner)),  # fused q|k|v
            "bqkv": jnp.zeros((1, inner + 2 * kv_inner), jnp.float32),
            "wo": normal(next(keys), (inner, dim)),
            "bo": jnp.zeros((1, dim), jnp.float32),
            "q_scale": jnp.ones((heads, dim_head), jnp.float32),     # per-head qk_norm_dim_scale
            "k_scale": jnp.ones((kv_heads, dim_head), jnp.float32),
            "ln2": jnp.ones((1, dim), jnp.float32),
            "w1": normal(next(keys), (dim, ff_inner)),
            "b1": jnp.zeros((1, ff_inner), jnp.float32),
            "w2": normal(next(keys), (ff_inner, dim)),
            "b2": jnp.zeros((1, dim), jnp.float32),
        }
        params["layers"].append(layer)
    return params


def rope_tables(seq_len, dim_head):
    half = dim_head // 2
    inv_freq = 1.0 / (10000.0 ** (jnp.arange(half, dtype=jnp.float32) / half))
    t = jnp.arange(seq_len, dtype=jnp.float32)
    freqs = t[:, None] * inv_freq[None, :]            # [S, half]
    freqs = jnp.concatenate([freqs, freqs], axis=-1)  # [S, Dh]
    return jnp.cos(freqs), jnp.sin(freqs)


def alibi_slopes(heads, alibi_num_heads):
    # slopes = 2^(-8i/n) for the first alibi_num_heads heads, 0 for the rest
    i = jnp.arange(1, alibi_num_heads + 1, dtype=jnp.float32)
    s = 2.0 ** (-8.0 * i / alibi_num_heads)
    s = jnp.concatenate([s, jnp.zeros((heads - alibi_num_heads,), jnp.float32)])
    return s.reshape(1, heads)                         # [1, H]


# ----------------------------------------------------------------------------
# Fuyu forward pass
# ----------------------------------------------------------------------------
def fuyu_forward(params, text, img, *, heads, dim_head, kv_heads, patch_size):
    B, St, D = text.shape
    C, Himg, Wimg = img.shape[1], img.shape[2], img.shape[3]
    P = patch_size
    nH, nW = Himg // P, Wimg // P
    inner = heads * dim_head
    kv_inner = kv_heads * dim_head

    # --- ImgToTransformer: NCHW image -> patch vectors -> linear to dim -----
    patches = img.reshape(B, C, nH, P, nW, P)
    patches = patches.transpose(0, 2, 4, 1, 3, 5).reshape(B * nH * nW, C * P * P)
    img_tok = fused_matmul(patches, params["patch_w"], params["patch_b"])
    img_tok = img_tok.reshape(B, nH * nW, D)

    x = jnp.concatenate([text, img_tok], axis=1)       # [B, S, D]
    S = x.shape[1]
    x2 = x.reshape(B * S, D)

    cos, sin = rope_tables(S, dim_head)
    slopes = alibi_slopes(heads, max(1, heads // 2))

    for lyr in params["layers"]:
        # --- attention block: fused LN1 + QKV projection ---------------------
        qkv = fused_matmul(x2, lyr["wqkv"], lyr["bqkv"], gamma=lyr["ln1"],
                           out_dtype=jnp.bfloat16)     # [B*S, inner+2*kv_inner]
        # head-major layout for the attention kernels (cheap leading-dim slicing)
        q = qkv[:, :inner].reshape(B, S, heads, dim_head).transpose(0, 2, 1, 3)
        k = (qkv[:, inner:inner + kv_inner]
             .reshape(B, S, kv_heads, dim_head).transpose(0, 2, 1, 3))
        v = (qkv[:, inner + kv_inner:]
             .reshape(B, S, kv_heads, dim_head).transpose(0, 2, 1, 3))

        q, k = rope_qk_norm(q, k, cos, sin, lyr["q_scale"], lyr["k_scale"])
        o = flash_attention(slopes, q, k, v)           # [B, S, H*Dh] bf16

        # output projection with fused residual add
        x2 = fused_matmul(o.reshape(B * S, inner), lyr["wo"], lyr["bo"],
                          residual=x2)

        # --- feedforward block: fused LN2 + GELU, fused residual -------------
        h = fused_matmul(x2, lyr["w1"], lyr["b1"], gamma=lyr["ln2"],
                         act="gelu", out_dtype=jnp.bfloat16)
        x2 = fused_matmul(h, lyr["w2"], lyr["b2"], residual=x2)

    # --- final norm fused into to_logits --------------------------------------
    logits = fused_matmul(x2, params["logits_w"], params["logits_b"],
                          gamma=params["ln_f"])
    return logits.reshape(B, S, -1)


# ----------------------------------------------------------------------------
if __name__ == "__main__":
    # small config consistent with the module's structure
    B = 2
    SEQ_TEXT = 12
    DIM = 32
    DEPTH = 2
    HEADS = 8
    DIM_HEAD = 8
    KV_HEADS = 2
    VOCAB = 256
    IMG_CH = 3
    IMG_HW = 16
    PATCH = 8

    root = jax.random.PRNGKey(0)
    k_param, k_text, k_img = jax.random.split(root, 3)

    params = make_params(k_param, dim=DIM, depth=DEPTH, heads=HEADS,
                         dim_head=DIM_HEAD, kv_heads=KV_HEADS, vocab=VOCAB,
                         img_channels=IMG_CH, patch_size=PATCH)

    text = jax.random.normal(k_text, (B, SEQ_TEXT, DIM), dtype=jnp.float32)
    img = jax.random.normal(k_img, (B, IMG_CH, IMG_HW, IMG_HW), dtype=jnp.float32)

    out = fuyu_forward(params, text, img, heads=HEADS, dim_head=DIM_HEAD,
                       kv_heads=KV_HEADS, patch_size=PATCH)
    out = jax.block_until_ready(out)

    n_patches = (IMG_HW // PATCH) ** 2
    assert out.shape == (B, SEQ_TEXT + n_patches, VOCAB), out.shape
    assert bool(jnp.all(jnp.isfinite(out)))
    print("KERNEL_OK")
</pallas_src>

<mosaic_0001>
module attributes {stable_mosaic.version = 11 : i64} {
  func.func @_fused_matmul_kernel(%arg0: i32, %arg1: i32, %arg2: i32, %arg3: memref<8x192xf32, #tpu.memory_space<vmem>>, %arg4: memref<192x32xbf16, #tpu.memory_space<vmem>>, %arg5: memref<1x32xf32, #tpu.memory_space<vmem>>, %arg6: memref<8x32xf32, #tpu.memory_space<vmem>>, %arg7: memref<8x32xf32, #tpu.memory_space<vmem>>) attributes {dimension_semantics = [#tpu.dimension_semantics<parallel>, #tpu.dimension_semantics<parallel>, #tpu.dimension_semantics<arbitrary>], iteration_bounds = array<i64: 1, 1, 1>, scalar_prefetch = 0 : i64, scratch_operands = 1 : i64, tpu.core_type = #tpu.core_type<tc>, window_params = [{transform_indices = @transform_0, window_bounds = array<i64: 8, 192>}, {transform_indices = @transform_1, window_bounds = array<i64: 192, 32>}, {transform_indices = @transform_2, window_bounds = array<i64: 1, 32>}, {transform_indices = @transform_3, window_bounds = array<i64: 8, 32>}]} {
    %c0_i32 = arith.constant 0 : i32
    %0 = arith.cmpi eq, %arg2, %c0_i32 : i32
    %1 = arith.extui %0 : i1 to i32
    %c0_i32_0 = arith.constant 0 : i32
    %2 = arith.cmpi ne, %1, %c0_i32_0 : i32
    scf.if %2 {
      %cst_10 = arith.constant 0.000000e+00 : f32
      %13 = vector.broadcast %cst_10 : f32 to vector<8x32xf32>
      %c0_11 = arith.constant 0 : index
      %c0_12 = arith.constant 0 : index
      %14 = vector.load %arg7[%c0_11, %c0_12] : memref<8x32xf32, #tpu.memory_space<vmem>>, vector<8x32xf32>
      tpu.vector_store %arg7[%c0_11, %c0_12], %13 {strides = array<i32>} : memref<8x32xf32, #tpu.memory_space<vmem>>, vector<8x32xf32>,
    } else {
    }
    %c0 = arith.constant 0 : index
    %c0_1 = arith.constant 0 : index
    %3 = vector.load %arg3[%c0, %c0_1] : memref<8x192xf32, #tpu.memory_space<vmem>>, vector<8x192xf32>
    %c0_2 = arith.constant 0 : index
    %c0_3 = arith.constant 0 : index
    %4 = vector.load %arg7[%c0_2, %c0_3] : memref<8x32xf32, #tpu.memory_space<vmem>>, vector<8x32xf32>
    %5 = arith.truncf %3 : vector<8x192xf32> to vector<8x192xbf16>
    %c0_4 = arith.constant 0 : index
    %c0_5 = arith.constant 0 : index
    %6 = vector.load %arg4[%c0_4, %c0_5] : memref<192x32xbf16, #tpu.memory_space<vmem>>, vector<192x32xbf16>
    %cst = arith.constant dense<0.000000e+00> : vector<8x32xf32>
    %7 = tpu.matmul %5, %6, %cst {dimension_numbers = #tpu.dot_dimension_numbers<[1], [0], [0], [1], [0, 0, 1, 1], [], []>} : vector<8x192xbf16>, vector<192x32xbf16>, vector<8x32xf32> -> vector<8x32xf32>
    %8 = arith.addf %4, %7 : vector<8x32xf32>
    %c0_6 = arith.constant 0 : index
    %c0_7 = arith.constant 0 : index
    %9 = vector.load %arg7[%c0_6, %c0_7] : memref<8x32xf32, #tpu.memory_space<vmem>>, vector<8x32xf32>
    tpu.vector_store %arg7[%c0_6, %c0_7], %8 {strides = array<i32>} : memref<8x32xf32, #tpu.memory_space<vmem>>, vector<8x32xf32>,
    %c0_i32_8 = arith.constant 0 : i32
    %10 = arith.cmpi eq, %arg2, %c0_i32_8 : i32
    %11 = arith.extui %10 : i1 to i32
    %c0_i32_9 = arith.constant 0 : i32
    %12 = arith.cmpi ne, %11, %c0_i32_9 : i32
    scf.if %12 {
      %c0_10 = arith.constant 0 : index
      %c0_11 = arith.constant 0 : index
      %13 = vector.load %arg7[%c0_10, %c0_11] : memref<8x32xf32, #tpu.memory_space<vmem>>, vector<8x32xf32>
      %c0_12 = arith.constant 0 : index
      %c0_13 = arith.constant 0 : index
      %14 = vector.load %arg5[%c0_12, %c0_13] : memref<1x32xf32, #tpu.memory_space<vmem>>, vector<1x32xf32>
      %15 = vector.broadcast %14 : vector<1x32xf32> to vector<8x32xf32>
      %16 = arith.addf %13, %15 : vector<8x32xf32>
      %c0_14 = arith.constant 0 : index
      %c0_15 = arith.constant 0 : index
      %17 = vector.load %arg6[%c0_14, %c0_15] : memref<8x32xf32, #tpu.memory_space<vmem>>, vector<8x32xf32>
      tpu.vector_store %arg6[%c0_14, %c0_15], %16 {strides = array<i32>} : memref<8x32xf32, #tpu.memory_space<vmem>>, vector<8x32xf32>,
    } else {
    }
    return
  }
  func.func @transform_0(%arg0: i32, %arg1: i32, %arg2: i32) -> (i32, i32) {
    %c0_i32 = arith.constant 0 : i32
    return %arg0, %arg2 : i32, i32
  }
  func.func @transform_1(%arg0: i32, %arg1: i32, %arg2: i32) -> (i32, i32) {
    %c0_i32 = arith.constant 0 : i32
    return %arg2, %arg1 : i32, i32
  }
  func.func @transform_2(%arg0: i32, %arg1: i32, %arg2: i32) -> (i32, i32) {
    %c0_i32 = arith.constant 0 : i32
    %c0_i32_0 = arith.constant 0 : i32
    return %c0_i32, %arg1 : i32, i32
  }
  func.func @transform_3(%arg0: i32, %arg1: i32, %arg2: i32) -> (i32, i32) {
    %c0_i32 = arith.constant 0 : i32
    return %arg0, %arg1 : i32, i32
  }
}

</mosaic_0001>

<bundles_post_ra>
// kernel: tpu_custom_call.1
= control target key start
LH: loop header
LB: loop body
LE: loop exit
PB: predicated region body
PF: predicated region fallthrough
CT: control target
= control target key end

     0   :  { %8 = vsyncpa [#allocation4], 0  ;;  %s443_s0 = inlined_call_operand.hbm [shape: f32[8,192], index: 0, kind: input, shape index: {}]   ;;  %s444_s1 = inlined_call_operand.hbm [shape: bf16[192,32], index: 1, kind: input, shape index: {}]   ;;  %s445_s2 = inlined_call_operand.hbm [shape: f32[1,32], index: 2, kind: input, shape index: {}]   ;;  %s446_s3 = inlined_call_operand.hbm [shape: f32[8,32], index: 3, kind: output, shape index: {}]  }
   0x1   :  { %9 = vsyncpa [#allocation7], 0 }
   0x2   :  { %10 = vsyncpa [#allocation5], 0  ;;  %s364_s12 = smov [#allocation6]   ;;  %s270_s16 = scalar_lea.hbm %s444_s1, 1536 }
   0x3   :  { %s26_s13 = sshll.u32 %s364_s12, 4  ;;  %p271_p0 = scmp.ne.s32.totalorder %s444_s1, %s270_s16  ;;  %s27_s13 = int_to_ptr.vmem [resolvable:$true] %s26_s13 }
   0x4   :  { %p274_p1 = scmp.lt.u32.totalorder %s270_s16, %s444_s1 }
   0x6   :  { %p276_p2 = pnand %p274_p1, %p271_p0 }
   0x8   :  { %279 = shalt.err (!%p276_p2)
}
   0x9   :  { %s280_s21 = scalar_lea.vmem %s27_s13, 1536  ;;  %p285_p4 = scmp.lt.s32.totalorder %s27_s13, %s27_s13 }
   0xa   :  { %p281_p3 = scmp.ne.s32.totalorder %s27_s13, %s280_s21  ;;  %p286_p5 = scmp.lt.s32.totalorder %s280_s21, %s280_s21 }
   0xc   :  { %p287_p6 = por %p286_p5, %p285_p4 }
   0xe   :  { %p288_p7 = pnand %p287_p6, %p281_p3 }
  0x10   :  { %291 = shalt.err (!%p288_p7)
}
  0x11   :  { %s365_s22 = smov 64   ;;  %s366_s23 = smov 4  }
  0x12   :  { %32 = dma.hbm_to_vmem [thread:$0]  %s444_s1, 1536, %s27_s13, [#allocation7], %s365_s22, %s365_s22, %s366_s23  }
  0x13   :  { %s367_s26 = smov [#allocation3]   ;;  %s368_s28 = smov [#allocation8]  }
  0x14   :  { %s17_s27 = sshll.u32 %s367_s26, 4  ;;  %s39_s29 = sshll.u32 %s368_s28, 4  ;;  %s18_s27 = int_to_ptr.vmem [resolvable:$true] %s17_s27  ;;  %s40_s29 = int_to_ptr.vmem [resolvable:$true] %s39_s29 }
  0x15   :  { %s292_s5 = scalar_lea.hbm %s443_s0, 256 }
  0x16   :  { %p293_p8 = scmp.ne.s32.totalorder %s443_s0, %s292_s5  ;;  %p296_p9 = scmp.lt.u32.totalorder %s292_s5, %s443_s0 }
  0x18   :  { %p298_p10 = pnand %p296_p9, %p293_p8 }
  0x1a   :  { %301 = shalt.err (!%p298_p10)
}
  0x1b   :  { %s302_s1 = scalar_lea.vmem %s18_s27, 256  ;;  %p307_p12 = scmp.lt.s32.totalorder %s18_s27, %s18_s27 }
  0x1c   :  { %p303_p11 = scmp.ne.s32.totalorder %s18_s27, %s302_s1  ;;  %p308_p13 = scmp.lt.s32.totalorder %s302_s1, %s302_s1 }
  0x1e   :  { %p309_p0 = por %p308_p13, %p307_p12 }
  0x20   :  { %p310_p1 = pnand %p309_p0, %p303_p11 }
  0x22   :  { %313 = shalt.err (!%p310_p1)
}
  0x23   :  { %20 = dma.hbm_to_vmem [thread:$0]  %s443_s0, 256, %s18_s27, [#allocation4]  }
  0x24   :  { %s314_s14 = scalar_lea.hbm %s445_s2, 16 }
  0x25   :  { %p315_p2 = scmp.ne.s32.totalorder %s445_s2, %s314_s14  ;;  %p318_p3 = scmp.lt.u32.totalorder %s314_s14, %s445_s2 }
  0x27   :  { %p320_p4 = pnand %p318_p3, %p315_p2 }
  0x29   :  { %323 = shalt.err (!%p320_p4)
}
  0x2a   :  { %s324_s19 = scalar_lea.vmem %s40_s29, 16  ;;  %s328_s20 = scalar_lea.vmem %s40_s29, 32 }
  0x2b   :  { %p325_p5 = scmp.ne.s32.totalorder %s40_s29, %s324_s19  ;;  %p329_p6 = scmp.lt.s32.totalorder %s40_s29, %s40_s29 }
  0x2c   :  { %p330_p7 = scmp.lt.s32.totalorder %s328_s20, %s324_s19 }
  0x2e   :  { %p331_p8 = por %p330_p7, %p329_p6 }
  0x30   :  { %p332_p9 = pnand %p331_p8, %p325_p5 }
  0x32   :  { %335 = shalt.err (!%p332_p9)
}
  0x33   :  { %42 = dma.hbm_to_vmem [thread:$0]  %s445_s2, 16, %s40_s29, [#allocation7]  }
  0x34   :  { %358 = dma.done.wait [#allocation4], 256  }
  0x35   :  { %359 = vsyncadd [#allocation4], 4294967040 }
  0x36   :  { %360 = dma.done.wait [#allocation7], 1552  }
  0x37   :  { %361 = vsyncadd [#allocation7], 4294965744  ;;  %vm57_vm0 = vcmask 261120   ;;  %v369_v0 = vmov 0   ;;  %v370_v1 = vmov 0.0   ;;  %v258_v2 = vld [vmem:[#allocation6] sm:$0xff]  }
  0x38   :  { %164 = vmatprep.subr.bf16.mxu0 %v369_v0  ;;  %58 = vst.msk [vmem:[#allocation2] sm:$0xff] %vm57_vm0, %v370_v1  ;;  %v259_v3 = vld [vmem:[#allocation6 + $0x8] sm:$0xff]   ;;  %v260_v4 = vld [vmem:[#allocation6 + $0x10] sm:$0xff]   ;;  %v261_v5 = vld [vmem:[#allocation6 + $0x18] sm:$0xff]   ;;  %vm160_vm1 = vcmask 523264   ;;  %s371_s2 = smov [#allocation9]  }
  0x39   :  { %165 = vmatpush1.bf16.msra.mxu0 %v258_v2  ;;  %v60_v6 = vld [vmem:[#allocation3 + $0x8] sm:$0xff]  ;;  %v262_v8 = vld [vmem:[#allocation6 + $0x20] sm:$0xff]   ;;  %v263_v9 = vld [vmem:[#allocation6 + $0x28] sm:$0xff]   ;;  %s226_s22 = sshll.u32 %s371_s2, 4  ;;  %s227_s22 = int_to_ptr.vmem [resolvable:$true] %s226_s22 }
  0x3a   :  { %166 = vmatprep.subr.bf16.mxu0 %v369_v0  ;;  %v63_v7 = vpack.c.bf16 %v60_v6, %v60_v6  ;;  %v264_v10 = vld [vmem:[#allocation6 + $0x30] sm:$0xff]   ;;  %v265_v11 = vld [vmem:[#allocation6 + $0x38] sm:$0xff]   ;;  %v266_v12 = vld [vmem:[#allocation6 + $0x40] sm:$0xff]   ;;  %s336_s23 = scalar_lea.vmem %s227_s22, 128  ;;  %p341_p11 = scmp.lt.s32.totalorder %s227_s22, %s227_s22 }
  0x3b   :  { %v267_v13 = vld [vmem:[#allocation6 + $0x48] sm:$0xff]   ;;  %v268_v14 = vld [vmem:[#allocation6 + $0x50] sm:$0xff]   ;;  %v269_v15 = vld [vmem:[#allocation6 + $0x58] sm:$0xff]   ;;  %p337_p10 = scmp.ne.s32.totalorder %s227_s22, %s336_s23  ;;  %p342_p12 = scmp.lt.s32.totalorder %s336_s23, %s336_s23 }
  0x3c   :  { %248 = vmatprep.mubr.msk.bf16.mxu0 %vm160_vm1, %v63_v7  ;;  %v59_v16 = vld [vmem:[#allocation3] sm:$0xff]  ;;  %v249_v24 = vld [vmem:[#allocation8] ss:$0 sm:$0xff] }
  0x3d   :  { %167 = vmatpush1.bf16.msra.mxu0 %v259_v3  ;;  %v62_v17 = vpack.c.bf16 %v59_v16, %v59_v16  ;;  %p343_p13 = por %p342_p12, %p341_p11 }
  0x3e   :  { %168 = vmatprep.subr.bf16.mxu0 %v369_v0 }
  0x3f   :  { %v61_v18 = vld [vmem:[#allocation2] sm:$0xff]  ;;  %p344_p0 = pnand %p343_p13, %p337_p10 }
  0x41   :  { %169 = vmatpush1.bf16.msra.mxu0 %v260_v4 }
  0x42   :  { %170 = vmatprep.subr.bf16.mxu0 %v369_v0 }
  0x45   :  { %171 = vmatpush1.bf16.msra.mxu0 %v261_v5 }
  0x46   :  { %172 = vmatprep.subr.bf16.mxu0 %v369_v0 }
  0x49   :  { %173 = vmatpush1.bf16.msra.mxu0 %v262_v8 }
  0x4a   :  { %174 = vmatprep.subr.bf16.mxu0 %v369_v0 }
  0x4d   :  { %175 = vmatpush1.bf16.msra.mxu0 %v263_v9 }
  0x4e   :  { %176 = vmatprep.subr.bf16.mxu0 %v369_v0 }
  0x51   :  { %177 = vmatpush1.bf16.msra.mxu0 %v264_v10 }
  0x52   :  { %178 = vmatprep.subr.bf16.mxu0 %v369_v0 }
  0x55   :  { %179 = vmatpush1.bf16.msra.mxu0 %v265_v11 }
  0x56   :  { %180 = vmatprep.subr.bf16.mxu0 %v369_v0 }
  0x59   :  { %181 = vmatpush1.bf16.msra.mxu0 %v266_v12 }
  0x5a   :  { %182 = vmatprep.subr.bf16.mxu0 %v369_v0 }
  0x5d   :  { %183 = vmatpush1.bf16.msra.mxu0 %v267_v13 }
  0x5e   :  { %184 = vmatprep.subr.bf16.mxu0 %v369_v0 }
  0x61   :  { %185 = vmatpush1.bf16.msra.mxu0 %v268_v14 }
  0x62   :  { %186 = vmatprep.subr.bf16.mxu0 %v369_v0 }
  0x65   :  { %187 = vmatpush1.bf16.msra.mxu0 %v269_v15 }
  0x68   :  { %197 = vmatmul.mubr.bf16.vlgmr.msra.gmra.mrb[0].mxu0 %v62_v17 }
 0x13b   :  { %v198_v19 = vpop.f32.mrb[0].mxu0 }
 0x13c   :  { %v204_v20 = vadd.f32 %v198_v19, %v61_v18  ;;  %v200_v21 = vpop.f32.mrb[1].mxu0 }
 0x13d   :  { %v201_v22 = vpop.f32.mrb[2].mxu0 }
 0x13e   :  { %206 = vst.msk [vmem:[#allocation2] sm:$0xff] %vm57_vm0, %v204_v20  ;;  %v202_v23 = vpop.f32.mrb[3].mxu0 }
 0x145   :  { %v210_v25 = vld [vmem:[#allocation2] sm:$0xff] }
 0x146   :  { %v218_v26 = vadd.f32 %v249_v24, %v210_v25 }
 0x148   :  { %219 = vst.msk [vmem:[#allocation9] sm:$0xff] %vm57_vm0, %v218_v26 }
 0x149   :  { %347 = shalt.err (!%p344_p0)
}
 0x14a   :  { %s348_s26 = scalar_lea.hbm %s446_s3, 128 }
 0x14b   :  { %p349_p1 = scmp.ne.s32.totalorder %s446_s3, %s348_s26  ;;  %p352_p2 = scmp.lt.u32.totalorder %s348_s26, %s446_s3 }
 0x14d   :  { %p354_p3 = pnand %p352_p2, %p349_p1 }
 0x14f   :  { %357 = shalt.err (!%p354_p3)
}
 0x150   :  { %229 = dma.vmem_to_hbm [thread:$0]  %s227_s22, 128, %s446_s3, [#allocation5]  }
 0x151   :  { %362 = dma.done.wait [#allocation5], 128  }
 0x152   :  { %363 = vsyncadd [#allocation5], 4294967168 }
 0x153   :  { %233 = vsyncpa [#allocation4], 1 }
 0x154   :  { %234 = vsyncpa [#allocation7], 1 }
 0x155   :  { %235 = vsyncpa [#allocation5], 1 }

</bundles_post_ra>
